<compile_context>
chip_gen: v7x
topology: tpu7x:2x2x1
jax: 0.10.0
libtpu: 0.0.40
codegen_flags: <defaults>
</compile_context>

<pallas_src>
import functools
import math

import jax
import jax.numpy as jnp
from jax import lax
from jax.experimental import pallas as pl
from jax.experimental.pallas import tpu as pltpu

_NEG_INF = -1e30          # finite "minus inf": keeps exp() NaN-free in masked tiles
_VMEM_LIMIT = 32 * 1024 * 1024   # explicit scoped-VMEM budget (fits v5e/v6e/v7x)


# ----------------------------------------------------------------------------
# Tile selection
# ----------------------------------------------------------------------------
def _pick_row_tile(n, cap=512):
    """Largest multiple-of-8 tile that divides n (sublane dim), capped."""
    for t in (512, 256, 128, 64, 32, 16, 8):
        if t <= cap and n % t == 0:
            return t
    # TODO(synk): pad + mask truly ragged shapes instead of a full-extent block
    # (only reached when n has no multiple-of-8 divisor <= cap).
    return n


def _pick_lane_tile(n, cap=256):
    """Largest multiple-of-128 tile dividing n, else the full dim (lane dim)."""
    for t in (256, 128):
        if t <= cap and n % t == 0:
            return t
    return n


# ----------------------------------------------------------------------------
# Phase 1: fused q/k/v projection   q,k,v = x @ Wq.T + bq, ...
# ----------------------------------------------------------------------------
def _qkv_proj_kernel(x_ref, wq_ref, wk_ref, wv_ref, bq_ref, bk_ref, bv_ref,
                     q_ref, k_ref, v_ref):
    x = x_ref[...]
    for w_ref, b_ref, o_ref in ((wq_ref, bq_ref, q_ref),
                                (wk_ref, bk_ref, k_ref),
                                (wv_ref, bv_ref, v_ref)):
        # Contract last dims of both operands -> x @ W.T, no transpose.
        y = lax.dot_general(x, w_ref[...],
                            dimension_numbers=(((1,), (1,)), ((), ())),
                            preferred_element_type=jnp.float32)
        o_ref[...] = (y + b_ref[...].astype(jnp.float32)).astype(o_ref.dtype)


def _qkv_proj(x2d, w_q, w_k, w_v, b_q, b_k, b_v, *, tm, tn, out_dtype):
    M, K = x2d.shape
    N = w_q.shape[0]
    # TODO(synk): add a K grid axis with an accumulator for very large D so the
    # (tn, K) weight / (tm, K) activation blocks stay bounded on v7x (64 MiB).
    w_spec = pl.BlockSpec((tn, K), lambda i, j: (j, 0))
    b_spec = pl.BlockSpec((1, tn), lambda i, j: (0, j))
    o_spec = pl.BlockSpec((tm, tn), lambda i, j: (i, j))
    o_shape = jax.ShapeDtypeStruct((M, N), out_dtype)
    return pl.pallas_call(
        _qkv_proj_kernel,
        out_shape=(o_shape, o_shape, o_shape),
        grid_spec=pltpu.PrefetchScalarGridSpec(
            num_scalar_prefetch=0,
            grid=(M // tm, N // tn),
            in_specs=[pl.BlockSpec((tm, K), lambda i, j: (i, 0)),
                      w_spec, w_spec, w_spec, b_spec, b_spec, b_spec],
            out_specs=[o_spec, o_spec, o_spec],
        ),
        compiler_params=pltpu.CompilerParams(
            dimension_semantics=("parallel", "parallel"),
            vmem_limit_bytes=_VMEM_LIMIT),
    )(x2d, w_q, w_k, w_v, b_q, b_k, b_v)


# ----------------------------------------------------------------------------
# Phase 3: out_proj   y = x @ W.T + b
# ----------------------------------------------------------------------------
def _linear_kernel(x_ref, w_ref, b_ref, o_ref):
    y = lax.dot_general(x_ref[...], w_ref[...],
                        dimension_numbers=(((1,), (1,)), ((), ())),
                        preferred_element_type=jnp.float32)
    o_ref[...] = (y + b_ref[...].astype(jnp.float32)).astype(o_ref.dtype)


def _linear(x2d, w, b, *, tm, tn, out_dtype):
    M, K = x2d.shape
    N = w.shape[0]
    return pl.pallas_call(
        _linear_kernel,
        out_shape=jax.ShapeDtypeStruct((M, N), out_dtype),
        grid_spec=pltpu.PrefetchScalarGridSpec(
            num_scalar_prefetch=0,
            grid=(M // tm, N // tn),
            in_specs=[pl.BlockSpec((tm, K), lambda i, j: (i, 0)),
                      pl.BlockSpec((tn, K), lambda i, j: (j, 0)),
                      pl.BlockSpec((1, tn), lambda i, j: (0, j))],
            out_specs=pl.BlockSpec((tm, tn), lambda i, j: (i, j)),
        ),
        compiler_params=pltpu.CompilerParams(
            dimension_semantics=("parallel", "parallel"),
            vmem_limit_bytes=_VMEM_LIMIT),
    )(x2d, w, b)


# ----------------------------------------------------------------------------
# Phase 2: flash attention, all heads per grid step, reading (B*S, D) slabs
# ----------------------------------------------------------------------------
def _flash_kernel(q_ref, k_ref, v_ref, o_ref, m_sc, l_sc, acc_sc,
                  *, n_heads, d_head, tq, tkv, causal):
    qi = pl.program_id(1)
    ki = pl.program_id(2)
    nk = pl.num_programs(2)

    @pl.when(ki == 0)
    def _init():
        m_sc[...] = jnp.full_like(m_sc, _NEG_INF)
        l_sc[...] = jnp.zeros_like(l_sc)
        acc_sc[...] = jnp.zeros_like(acc_sc)

    def _update():
        q = q_ref[...]          # (tq,  D)  lane-dense load; scale already in q
        k = k_ref[...]          # (tkv, D)
        v = v_ref[...]          # (tkv, D)

        if causal:
            # Built once per (q, kv) tile and shared by all heads.
            row = qi * tq + lax.broadcasted_iota(jnp.int32, (tq, tkv), 0)
            col = ki * tkv + lax.broadcasted_iota(jnp.int32, (tq, tkv), 1)
            keep = col <= row

        for h in range(n_heads):
            hs = slice(h * d_head, (h + 1) * d_head)
            qh, kh, vh = q[:, hs], k[:, hs], v[:, hs]          # (tq|tkv, dh)

            s = lax.dot_general(qh, kh,                        # q @ k.T
                                dimension_numbers=(((1,), (1,)), ((), ())),
                                preferred_element_type=jnp.float32)   # (tq, tkv)
            if causal:
                s = jnp.where(keep, s, _NEG_INF)

            m_prev = m_sc[:, h:h + 1]
            m_new = jnp.maximum(m_prev, jnp.max(s, axis=-1, keepdims=True))
            alpha = jnp.exp(m_prev - m_new)
            p = jnp.exp(s - m_new)
            l_sc[:, h:h + 1] = (alpha * l_sc[:, h:h + 1]
                                + jnp.sum(p, axis=-1, keepdims=True))
            # p cast to the value dtype (bf16 in the default path) -> native MXU.
            acc_sc[:, hs] = alpha * acc_sc[:, hs] + lax.dot_general(
                p.astype(vh.dtype), vh,
                dimension_numbers=(((1,), (0,)), ((), ())),
                preferred_element_type=jnp.float32)
            m_sc[:, h:h + 1] = m_new

    if causal:
        # Fully-masked kv blocks: compute skipped here, DMA skipped by the
        # clamped index_map in _flash_attention.
        pl.when(ki * tkv <= qi * tq + (tq - 1))(_update)
    else:
        _update()

    @pl.when(ki == nk - 1)
    def _finalize():
        # NOTE: assumes every query row sees >= 1 unmasked key (true here);
        # a key-padding mask would need an explicit l==0 guard.
        for h in range(n_heads):
            hs = slice(h * d_head, (h + 1) * d_head)
            l = l_sc[:, h:h + 1]
            inv = pl.reciprocal(l, approx=True)       # EUP
            inv = inv * (2.0 - l * inv)               # one Newton step -> ~exact
            acc_sc[:, hs] = acc_sc[:, hs] * inv
        o_ref[...] = acc_sc[...].astype(o_ref.dtype)  # single lane-dense store


def _flash_attention(q, k, v, *, batch, seq, n_heads, causal, tq, tkv, out_dtype):
    rows, D = q.shape
    d_head = D // n_heads
    nqb, nkvb = seq // tq, seq // tkv

    q_map = lambda b, qi, ki: (b * nqb + qi, 0)
    if causal:
        def kv_map(b, qi, ki):
            last = (qi * tq + (tq - 1)) // tkv        # last unmasked kv block
            return (b * nkvb + jnp.minimum(ki, last), 0)
    else:
        kv_map = lambda b, qi, ki: (b * nkvb + ki, 0)

    kernel = functools.partial(_flash_kernel, n_heads=n_heads, d_head=d_head,
                               tq=tq, tkv=tkv, causal=causal)

    return pl.pallas_call(
        kernel,
        out_shape=jax.ShapeDtypeStruct((rows, D), out_dtype),
        grid_spec=pltpu.PrefetchScalarGridSpec(
            num_scalar_prefetch=0,
            grid=(batch, nqb, nkvb),
            in_specs=[pl.BlockSpec((tq, D), q_map),
                      pl.BlockSpec((tkv, D), kv_map),
                      pl.BlockSpec((tkv, D), kv_map)],
            out_specs=pl.BlockSpec((tq, D), q_map),
            scratch_shapes=[
                pltpu.VMEM((tq, n_heads), jnp.float32),   # running max per head
                pltpu.VMEM((tq, n_heads), jnp.float32),   # running denom per head
                pltpu.VMEM((tq, D), jnp.float32),         # f32 output accumulator
            ],
        ),
        compiler_params=pltpu.CompilerParams(
            dimension_semantics=("parallel", "parallel", "arbitrary"),
            vmem_limit_bytes=_VMEM_LIMIT),
    )(q, k, v)


# ----------------------------------------------------------------------------
# Top-level wrapper (matches SelfAttention.forward semantics)
# ----------------------------------------------------------------------------
def self_attention(x, w_in, b_in, w_out, b_out, *, n_heads, causal_mask=False,
                   compute_dtype=jnp.bfloat16):
    # compute_dtype: MXU operand dtype (bf16 default; f32 gives a parity mode).
    orig_dtype = x.dtype
    B, S, D = x.shape
    assert D % n_heads == 0
    d_head = D // n_heads
    cdt = orig_dtype if compute_dtype is None else compute_dtype

    # Split in_proj into q/k/v pieces and fold 1/sqrt(d_head) into q (in f32,
    # before any bf16 cast). Biases stay f32 — added to the f32 accumulator.
    scale = 1.0 / math.sqrt(d_head)
    w_in32 = w_in.astype(jnp.float32)
    b_in32 = b_in.astype(jnp.float32)
    w_q = (w_in32[:D] * scale).astype(cdt)
    w_k = w_in32[D:2 * D].astype(cdt)
    w_v = w_in32[2 * D:].astype(cdt)
    b_q = b_in32[:, :D] * scale
    b_k = b_in32[:, D:2 * D]
    b_v = b_in32[:, 2 * D:]

    rows = B * S
    tm = _pick_row_tile(rows)
    tn = _pick_lane_tile(D)

    # TODO(synk): at tiny shapes (like the demo) a single fused pallas_call (or
    # plain XLA) would avoid the 3 kernel launches entirely.

    # Phase 1: q/k/v projection -> three lane-dense (B*S, D) buffers.
    x2d = x.reshape(rows, D).astype(cdt)
    q, k, v = _qkv_proj(x2d, w_q, w_k, w_v, b_q, b_k, b_v,
                        tm=tm, tn=tn, out_dtype=cdt)

    # Phase 2: flash attention directly on those buffers (no transposes).
    t_attn = _pick_row_tile(S, cap=256)
    attn = _flash_attention(q, k, v, batch=B, seq=S, n_heads=n_heads,
                            causal=causal_mask, tq=t_attn, tkv=t_attn,
                            out_dtype=cdt)                    # (B*S, D)

    # Phase 3: out_proj consumes the attention output unchanged.
    out = _linear(attn, w_out.astype(cdt), b_out.astype(jnp.float32),
                  tm=tm, tn=tn, out_dtype=cdt)
    return out.reshape(B, S, D).astype(orig_dtype)


# ----------------------------------------------------------------------------
# Pure-JAX reference mirroring the PyTorch forward
# ----------------------------------------------------------------------------
def _reference(x, w_in, b_in, w_out, b_out, n_heads, causal_mask=False):
    B, S, D = x.shape
    d_head = D // n_heads
    qkv = x @ w_in.T + b_in[0]
    q, k, v = jnp.split(qkv, 3, axis=-1)

    def to_heads(t):
        return t.reshape(B, S, n_heads, d_head).transpose(0, 2, 1, 3)

    q, k, v = to_heads(q), to_heads(k), to_heads(v)
    w = q @ jnp.swapaxes(k, -1, -2)
    if causal_mask:
        mask = jnp.triu(jnp.ones((S, S), dtype=bool), 1)
        w = jnp.where(mask, -jnp.inf, w)
    w = w / math.sqrt(d_head)
    w = jax.nn.softmax(w, axis=-1)
    o = (w @ v).transpose(0, 2, 1, 3).reshape(B, S, D)
    return o @ w_out.T + b_out[0]


if __name__ == "__main__":
    # SelfAttention(n_heads=4, d_embed=32) on x of shape (batch=2, seq=8, d_embed=32)
    B, S, D, H = 2, 8, 32, 4

    key = jax.random.PRNGKey(0)
    kx, k1, k2, k3, k4 = jax.random.split(key, 5)

    bound = 1.0 / math.sqrt(D)
    w_in = jax.random.uniform(k1, (3 * D, D), jnp.float32, -bound, bound)
    b_in = jax.random.uniform(k2, (1, 3 * D), jnp.float32, -bound, bound)
    w_out = jax.random.uniform(k3, (D, D), jnp.float32, -bound, bound)
    b_out = jax.random.uniform(k4, (1, D), jnp.float32, -bound, bound)
    x = jax.random.normal(kx, (B, S, D), jnp.float32)

    for causal in (False, True):
        ref = _reference(x, w_in, b_in, w_out, b_out, H, causal_mask=causal)

        # Default path: bf16 MXU operands, f32 accumulation.
        out_bf16 = jax.block_until_ready(
            self_attention(x, w_in, b_in, w_out, b_out, n_heads=H,
                           causal_mask=causal))
        assert out_bf16.shape == (B, S, D)
        assert jnp.allclose(out_bf16, ref, atol=5e-2, rtol=5e-2), \
            f"bf16 mismatch (causal={causal})"

        # f32 parity mode (tight check against the f32 reference).
        out_f32 = jax.block_until_ready(
            self_attention(x, w_in, b_in, w_out, b_out, n_heads=H,
                           causal_mask=causal, compute_dtype=jnp.float32))
        assert jnp.allclose(out_f32, ref, atol=2e-3, rtol=2e-3), \
            f"f32 mismatch (causal={causal})"

    print("KERNEL_OK")
</pallas_src>

<mosaic_0001>
module attributes {stable_mosaic.version = 11 : i64} {
  func.func @_qkv_proj_kernel(%arg0: i32, %arg1: i32, %arg2: memref<16x32xbf16, #tpu.memory_space<vmem>>, %arg3: memref<32x32xbf16, #tpu.memory_space<vmem>>, %arg4: memref<32x32xbf16, #tpu.memory_space<vmem>>, %arg5: memref<32x32xbf16, #tpu.memory_space<vmem>>, %arg6: memref<1x32xf32, #tpu.memory_space<vmem>>, %arg7: memref<1x32xf32, #tpu.memory_space<vmem>>, %arg8: memref<1x32xf32, #tpu.memory_space<vmem>>, %arg9: memref<16x32xbf16, #tpu.memory_space<vmem>>, %arg10: memref<16x32xbf16, #tpu.memory_space<vmem>>, %arg11: memref<16x32xbf16, #tpu.memory_space<vmem>>) attributes {dimension_semantics = [#tpu.dimension_semantics<parallel>, #tpu.dimension_semantics<parallel>], iteration_bounds = array<i64: 1, 1>, scalar_prefetch = 0 : i64, scratch_operands = 0 : i64, tpu.core_type = #tpu.core_type<tc>, window_params = [{transform_indices = @transform_0, window_bounds = array<i64: 16, 32>}, {transform_indices = @transform_1, window_bounds = array<i64: 32, 32>}, {transform_indices = @transform_2, window_bounds = array<i64: 32, 32>}, {transform_indices = @transform_3, window_bounds = array<i64: 32, 32>}, {transform_indices = @transform_4, window_bounds = array<i64: 1, 32>}, {transform_indices = @transform_5, window_bounds = array<i64: 1, 32>}, {transform_indices = @transform_6, window_bounds = array<i64: 1, 32>}, {transform_indices = @transform_7, window_bounds = array<i64: 16, 32>}, {transform_indices = @transform_8, window_bounds = array<i64: 16, 32>}, {transform_indices = @transform_9, window_bounds = array<i64: 16, 32>}]} {
    %c0 = arith.constant 0 : index
    %c0_0 = arith.constant 0 : index
    %0 = vector.load %arg2[%c0, %c0_0] : memref<16x32xbf16, #tpu.memory_space<vmem>>, vector<16x32xbf16>
    %c0_1 = arith.constant 0 : index
    %c0_2 = arith.constant 0 : index
    %1 = vector.load %arg3[%c0_1, %c0_2] : memref<32x32xbf16, #tpu.memory_space<vmem>>, vector<32x32xbf16>
    %cst = arith.constant dense<0.000000e+00> : vector<16x32xf32>
    %2 = tpu.matmul %0, %1, %cst {dimension_numbers = #tpu.dot_dimension_numbers<[1], [1], [0], [0], [0, 0, 1, 0], [], []>} : vector<16x32xbf16>, vector<32x32xbf16>, vector<16x32xf32> -> vector<16x32xf32>
    %c0_3 = arith.constant 0 : index
    %c0_4 = arith.constant 0 : index
    %3 = vector.load %arg6[%c0_3, %c0_4] : memref<1x32xf32, #tpu.memory_space<vmem>>, vector<1x32xf32>
    %4 = vector.broadcast %3 : vector<1x32xf32> to vector<16x32xf32>
    %5 = arith.addf %2, %4 : vector<16x32xf32>
    %6 = arith.truncf %5 : vector<16x32xf32> to vector<16x32xbf16>
    %c0_5 = arith.constant 0 : index
    %c0_6 = arith.constant 0 : index
    %7 = vector.load %arg9[%c0_5, %c0_6] : memref<16x32xbf16, #tpu.memory_space<vmem>>, vector<16x32xbf16>
    tpu.vector_store %arg9[%c0_5, %c0_6], %6 {strides = array<i32>} : memref<16x32xbf16, #tpu.memory_space<vmem>>, vector<16x32xbf16>,
    %c0_7 = arith.constant 0 : index
    %c0_8 = arith.constant 0 : index
    %8 = vector.load %arg4[%c0_7, %c0_8] : memref<32x32xbf16, #tpu.memory_space<vmem>>, vector<32x32xbf16>
    %cst_9 = arith.constant dense<0.000000e+00> : vector<16x32xf32>
    %9 = tpu.matmul %0, %8, %cst_9 {dimension_numbers = #tpu.dot_dimension_numbers<[1], [1], [0], [0], [0, 0, 1, 0], [], []>} : vector<16x32xbf16>, vector<32x32xbf16>, vector<16x32xf32> -> vector<16x32xf32>
    %c0_10 = arith.constant 0 : index
    %c0_11 = arith.constant 0 : index
    %10 = vector.load %arg7[%c0_10, %c0_11] : memref<1x32xf32, #tpu.memory_space<vmem>>, vector<1x32xf32>
    %11 = vector.broadcast %10 : vector<1x32xf32> to vector<16x32xf32>
    %12 = arith.addf %9, %11 : vector<16x32xf32>
    %13 = arith.truncf %12 : vector<16x32xf32> to vector<16x32xbf16>
    %c0_12 = arith.constant 0 : index
    %c0_13 = arith.constant 0 : index
    %14 = vector.load %arg10[%c0_12, %c0_13] : memref<16x32xbf16, #tpu.memory_space<vmem>>, vector<16x32xbf16>
    tpu.vector_store %arg10[%c0_12, %c0_13], %13 {strides = array<i32>} : memref<16x32xbf16, #tpu.memory_space<vmem>>, vector<16x32xbf16>,
    %c0_14 = arith.constant 0 : index
    %c0_15 = arith.constant 0 : index
    %15 = vector.load %arg5[%c0_14, %c0_15] : memref<32x32xbf16, #tpu.memory_space<vmem>>, vector<32x32xbf16>
    %cst_16 = arith.constant dense<0.000000e+00> : vector<16x32xf32>
    %16 = tpu.matmul %0, %15, %cst_16 {dimension_numbers = #tpu.dot_dimension_numbers<[1], [1], [0], [0], [0, 0, 1, 0], [], []>} : vector<16x32xbf16>, vector<32x32xbf16>, vector<16x32xf32> -> vector<16x32xf32>
    %c0_17 = arith.constant 0 : index
    %c0_18 = arith.constant 0 : index
    %17 = vector.load %arg8[%c0_17, %c0_18] : memref<1x32xf32, #tpu.memory_space<vmem>>, vector<1x32xf32>
    %18 = vector.broadcast %17 : vector<1x32xf32> to vector<16x32xf32>
    %19 = arith.addf %16, %18 : vector<16x32xf32>
    %20 = arith.truncf %19 : vector<16x32xf32> to vector<16x32xbf16>
    %c0_19 = arith.constant 0 : index
    %c0_20 = arith.constant 0 : index
    %21 = vector.load %arg11[%c0_19, %c0_20] : memref<16x32xbf16, #tpu.memory_space<vmem>>, vector<16x32xbf16>
    tpu.vector_store %arg11[%c0_19, %c0_20], %20 {strides = array<i32>} : memref<16x32xbf16, #tpu.memory_space<vmem>>, vector<16x32xbf16>,
    return
  }
  func.func @transform_0(%arg0: i32, %arg1: i32) -> (i32, i32) {
    %c0_i32 = arith.constant 0 : i32
    %c0_i32_0 = arith.constant 0 : i32
    return %arg0, %c0_i32 : i32, i32
  }
  func.func @transform_1(%arg0: i32, %arg1: i32) -> (i32, i32) {
    %c0_i32 = arith.constant 0 : i32
    %c0_i32_0 = arith.constant 0 : i32
    return %arg1, %c0_i32 : i32, i32
  }
  func.func @transform_2(%arg0: i32, %arg1: i32) -> (i32, i32) {
    %c0_i32 = arith.constant 0 : i32
    %c0_i32_0 = arith.constant 0 : i32
    return %arg1, %c0_i32 : i32, i32
  }
  func.func @transform_3(%arg0: i32, %arg1: i32) -> (i32, i32) {
    %c0_i32 = arith.constant 0 : i32
    %c0_i32_0 = arith.constant 0 : i32
    return %arg1, %c0_i32 : i32, i32
  }
  func.func @transform_4(%arg0: i32, %arg1: i32) -> (i32, i32) {
    %c0_i32 = arith.constant 0 : i32
    %c0_i32_0 = arith.constant 0 : i32
    return %c0_i32, %arg1 : i32, i32
  }
  func.func @transform_5(%arg0: i32, %arg1: i32) -> (i32, i32) {
    %c0_i32 = arith.constant 0 : i32
    %c0_i32_0 = arith.constant 0 : i32
    return %c0_i32, %arg1 : i32, i32
  }
  func.func @transform_6(%arg0: i32, %arg1: i32) -> (i32, i32) {
    %c0_i32 = arith.constant 0 : i32
    %c0_i32_0 = arith.constant 0 : i32
    return %c0_i32, %arg1 : i32, i32
  }
  func.func @transform_7(%arg0: i32, %arg1: i32) -> (i32, i32) {
    %c0_i32 = arith.constant 0 : i32
    return %arg0, %arg1 : i32, i32
  }
  func.func @transform_8(%arg0: i32, %arg1: i32) -> (i32, i32) {
    %c0_i32 = arith.constant 0 : i32
    return %arg0, %arg1 : i32, i32
  }
  func.func @transform_9(%arg0: i32, %arg1: i32) -> (i32, i32) {
    %c0_i32 = arith.constant 0 : i32
    return %arg0, %arg1 : i32, i32
  }
}

</mosaic_0001>

<bundles_post_ra>
// kernel: tpu_custom_call.1
= control target key start
LH: loop header
LB: loop body
LE: loop exit
PB: predicated region body
PF: predicated region fallthrough
CT: control target
= control target key end

     0   :  { %15 = vsyncpa [#allocation3], 0  ;;  %s837_s0 = inlined_call_operand.hbm [shape: bf16[16,32], index: 0, kind: input, shape index: {}]   ;;  %s838_s1 = inlined_call_operand.hbm [shape: bf16[32,32], index: 1, kind: input, shape index: {}]   ;;  %s839_s2 = inlined_call_operand.hbm [shape: bf16[32,32], index: 2, kind: input, shape index: {}]   ;;  %s840_s3 = inlined_call_operand.hbm [shape: bf16[32,32], index: 3, kind: input, shape index: {}]   ;;  %s841_s4 = inlined_call_operand.vmem [shape: f32[1,32], index: 4, kind: input, shape index: {}]   ;;  %s842_s5 = inlined_call_operand.vmem [shape: f32[1,32], index: 5, kind: input, shape index: {}]   ;;  %s843_s6 = inlined_call_operand.vmem [shape: f32[1,32], index: 6, kind: input, shape index: {}]   ;;  %s844_s7 = inlined_call_operand.hbm [shape: bf16[16,32], index: 7, kind: output, shape index: {0}]   ;;  %s845_s8 = inlined_call_operand.hbm [shape: bf16[16,32], index: 8, kind: output, shape index: {1}]   ;;  %s846_s9 = inlined_call_operand.hbm [shape: bf16[16,32], index: 9, kind: output, shape index: {2}]  }
   0x1   :  { %16 = vsyncpa [#allocation6], 0 }
   0x2   :  { %17 = vsyncpa [#allocation9], 0 }
   0x3   :  { %18 = vsyncpa [#allocation4], 0 }
   0x4   :  { %19 = vsyncpa [#allocation12], 0  ;;  %s623_s30 = smov [#allocation5]   ;;  %s624_s11 = smov [#allocation2]  }
   0x5   :  { %s37_s10 = sshll.u32 %s623_s30, 4  ;;  %s25_s12 = sshll.u32 %s624_s11, 4  ;;  %s38_s10 = int_to_ptr.vmem [resolvable:$true] %s37_s10  ;;  %s684_s12 = int_to_ptr.vmem [resolvable:$true] %s25_s12 }
   0x6   :  { %s459_s15 = scalar_lea.hbm %s838_s1, 256 }
   0x7   :  { %p460_p0 = scmp.ne.s32.totalorder %s838_s1, %s459_s15  ;;  %p463_p1 = scmp.lt.u32.totalorder %s459_s15, %s838_s1 }
   0x9   :  { %p465_p2 = pnand %p463_p1, %p460_p0 }
   0xb   :  { %468 = shalt.err (!%p465_p2)
}
   0xc   :  { %s469_s20 = scalar_lea.vmem %s38_s10, 256  ;;  %p474_p4 = scmp.lt.s32.totalorder %s38_s10, %s38_s10 }
   0xd   :  { %p470_p3 = scmp.ne.s32.totalorder %s38_s10, %s469_s20  ;;  %p475_p5 = scmp.lt.s32.totalorder %s469_s20, %s469_s20 }
   0xf   :  { %p476_p6 = por %p475_p5, %p474_p4 }
  0x11   :  { %p477_p7 = pnand %p476_p6, %p470_p3 }
  0x13   :  { %480 = shalt.err (!%p477_p7)
}
  0x14   :  { %s625_s21 = smov 64   ;;  %s626_s22 = smov 4  }
  0x15   :  { %43 = dma.hbm_to_vmem [thread:$0]  %s838_s1, 256, %s38_s10, [#allocation6], %s625_s21, %s625_s21, %s626_s22  }
  0x16   :  { %s481_s27 = scalar_lea.hbm %s837_s0, 128 }
  0x17   :  { %p482_p8 = scmp.ne.s32.totalorder %s837_s0, %s481_s27  ;;  %p485_p9 = scmp.lt.u32.totalorder %s481_s27, %s837_s0 }
  0x19   :  { %p487_p10 = pnand %p485_p9, %p482_p8 }
  0x1b   :  { %490 = shalt.err (!%p487_p10)
}
  0x1c   :  { %s491_s13 = scalar_lea.vmem %s684_s12, 128  ;;  %p496_p12 = scmp.lt.s32.totalorder %s684_s12, %s684_s12 }
  0x1d   :  { %p492_p11 = scmp.ne.s32.totalorder %s684_s12, %s491_s13  ;;  %p497_p13 = scmp.lt.s32.totalorder %s491_s13, %s491_s13 }
  0x1f   :  { %p498_p0 = por %p497_p13, %p496_p12 }
  0x21   :  { %p499_p1 = pnand %p498_p0, %p492_p11 }
  0x23   :  { %502 = shalt.err (!%p499_p1)
}
  0x24   :  { %31 = dma.hbm_to_vmem [thread:$0]  %s837_s0, 128, %s684_s12, [#allocation3], %s625_s21, %s625_s21, %s626_s22  }
  0x25   :  { %s627_s14 = smov [#allocation7]   ;;  %s628_s16 = smov [#allocation8]  }
  0x26   :  { %s49_s15 = sshll.u32 %s627_s14, 4  ;;  %s61_s17 = sshll.u32 %s628_s16, 4  ;;  %s50_s15 = int_to_ptr.vmem [resolvable:$true] %s49_s15  ;;  %s721_s17 = int_to_ptr.vmem [resolvable:$true] %s61_s17 }
  0x27   :  { %s503_s20 = scalar_lea.hbm %s839_s2, 256 }
  0x28   :  { %p504_p2 = scmp.ne.s32.totalorder %s839_s2, %s503_s20  ;;  %p507_p3 = scmp.lt.u32.totalorder %s503_s20, %s839_s2 }
  0x2a   :  { %p509_p4 = pnand %p507_p3, %p504_p2 }
  0x2c   :  { %512 = shalt.err (!%p509_p4)
}
  0x2d   :  { %s513_s0 = scalar_lea.vmem %s50_s15, 256  ;;  %p518_p6 = scmp.lt.s32.totalorder %s50_s15, %s50_s15 }
  0x2e   :  { %p514_p5 = scmp.ne.s32.totalorder %s50_s15, %s513_s0  ;;  %p519_p7 = scmp.lt.s32.totalorder %s513_s0, %s513_s0 }
  0x30   :  { %p520_p8 = por %p519_p7, %p518_p6 }
  0x32   :  { %p521_p9 = pnand %p520_p8, %p514_p5 }
  0x34   :  { %524 = shalt.err (!%p521_p9)
}
  0x35   :  { %55 = dma.hbm_to_vmem [thread:$0]  %s839_s2, 256, %s50_s15, [#allocation6], %s625_s21, %s625_s21, %s626_s22  }
  0x36   :  { %s525_s30 = scalar_lea.hbm %s840_s3, 256 }
  0x37   :  { %p526_p10 = scmp.ne.s32.totalorder %s840_s3, %s525_s30  ;;  %p529_p11 = scmp.lt.u32.totalorder %s525_s30, %s840_s3 }
  0x39   :  { %p531_p12 = pnand %p529_p11, %p526_p10 }
  0x3b   :  { %534 = shalt.err (!%p531_p12)
}
  0x3c   :  { %s535_s14 = scalar_lea.vmem %s721_s17, 256  ;;  %p540_p0 = scmp.lt.s32.totalorder %s721_s17, %s721_s17 }
  0x3d   :  { %p536_p13 = scmp.ne.s32.totalorder %s721_s17, %s535_s14  ;;  %p541_p1 = scmp.lt.s32.totalorder %s535_s14, %s535_s14 }
  0x3f   :  { %p542_p2 = por %p541_p1, %p540_p0 }
  0x41   :  { %p543_p3 = pnand %p542_p2, %p536_p13 }
  0x43   :  { %546 = shalt.err (!%p543_p3)
}
  0x44   :  { %67 = dma.hbm_to_vmem [thread:$0]  %s840_s3, 256, %s721_s17, [#allocation9], %s625_s21, %s625_s21, %s626_s22  }
  0x45   :  { %613 = dma.done.wait [#allocation3], 128  }
  0x46   :  { %614 = vsyncadd [#allocation3], 4294967168 }
  0x47   :  { %615 = dma.done.wait [#allocation6], 512  }
  0x48   :  { %616 = vsyncadd [#allocation6], 4294966784 }
  0x49   :  { %617 = dma.done.wait [#allocation9], 256  }
  0x4a   :  { %618 = vsyncadd [#allocation9], 4294967040  ;;  %v629_v0 = vmov 0.0   ;;  %vm630_vm0 = vmmov 0   ;;  %vm115_vm1 = vcmask 261120   ;;  %v452_v1 = vld [vmem:[#allocation5] sm:$0xff]  }
  0x4b   :  { %417 = vmatprep.subr.bf16.mxu0 %v629_v0  ;;  %425 = vmatprep.subr.bf16.mxu1 %v629_v0  ;;  %v120_v2 = vsel %vm115_vm1, %v452_v1, 0  ;;  %v454_v3 = vld [vmem:[#allocation7] sm:$0xff]   ;;  %v453_v4 = vld [vmem:[#allocation5 + $0x8] sm:$0xff]   ;;  %v457_v6 = vld [vmem:[#allocation7 + $0x8] sm:$0xff]   ;;  %vm174_vm2 = vcmask 257024   ;;  %s631_s19 = smov [#allocation10]  }
  0x4c   :  { %421 = vmatprep.mubr.msk.bf16.mxu0 %vm630_vm0, %v629_v0  ;;  %429 = vmatprep.mubr.msk.bf16.mxu1 %vm630_vm0, %v629_v0  ;;  %v199_v5 = vsel %vm115_vm1, %v454_v3, 0  ;;  %v123_v7 = vsel %vm115_vm1, %v453_v4, 0  ;;  %v202_v8 = vsel %vm115_vm1, %v457_v6, 0  ;;  %v456_v9 = vld [vmem:[#allocation8] sm:$0xff]   ;;  %v455_v10 = vld [vmem:[#allocation2] sm:$0xff]   ;;  %v458_v12 = vld [vmem:[#allocation8 + $0x8] sm:$0xff]  }
  0x4d   :  { %418 = vmatpush3.bf16.xpose.msra.mxu0 %v120_v2  ;;  %426 = vmatpush3.bf16.xpose.msra.mxu1 %v199_v5  ;;  %v277_v11 = vsel %vm115_vm1, %v456_v9, 0  ;;  %v280_v13 = vsel %vm115_vm1, %v458_v12, 0  ;;  %v383_v14 = vld [vmem:[%s841_s4] ss:$0 sm:$0xff]  ;;  %s338_s20 = sshll.u32 %s631_s19, 4  ;;  %s632_s23 = smov [#allocation11]   ;;  %s339_s20 = int_to_ptr.vmem [resolvable:$true] %s338_s20 }
  0x4e   :  { %419 = vmatprep.subr.bf16.mxu0 %v629_v0  ;;  %427 = vmatprep.subr.bf16.mxu1 %v629_v0  ;;  %v390_v16 = vld [vmem:[%s842_s5] ss:$0 sm:$0xff]  ;;  %s350_s4 = sshll.u32 %s632_s23, 4  ;;  %s547_s5 = scalar_lea.vmem %s339_s20, 128  ;;  %s779_s4 = int_to_ptr.vmem [resolvable:$true] %s350_s4 }
  0x4f   :  { %p548_p4 = scmp.ne.s32.totalorder %s339_s20, %s547_s5  ;;  %p552_p5 = scmp.lt.s32.totalorder %s339_s20, %s339_s20 }
  0x50   :  { %p553_p6 = scmp.lt.s32.totalorder %s547_s5, %s547_s5 }
  0x52   :  { %p554_p7 = por %p553_p6, %p552_p5 }
  0x54   :  { %p555_p8 = pnand %p554_p7, %p548_p4 }
  0x55   :  { %420 = vmatpush3.bf16.xpose.msra.mxu0 %v123_v7  ;;  %428 = vmatpush3.bf16.xpose.msra.mxu1 %v202_v8 }
  0x56   :  { %433 = vmatprep.subr.bf16.mxu0 %v629_v0 }
  0x5c   :  { %422 = vmatmul.mubr.msk.bf16.vlgmr.msra.gmra.mrb[0].mxu0 %vm115_vm1, %v455_v10  ;;  %430 = vmatmul.mubr.msk.bf16.vlgmr.msra.gmra.mrb[0].mxu1 %vm115_vm1, %v455_v10 }
  0x5d   :  { %434 = vmatpush3.bf16.xpose.msra.mxu0 %v277_v11  ;;  %437 = vmatprep.mubr.msk.bf16.mxu0 %vm630_vm0, %v629_v0 }
  0x5e   :  { %435 = vmatprep.subr.bf16.mxu0 %v629_v0 }
  0x65   :  { %436 = vmatpush3.bf16.xpose.msra.mxu0 %v280_v13 }
  0x6c   :  { %438 = vmatmul.mubr.msk.bf16.vlgmr.msra.gmra.mrb[4].mxu0 %vm115_vm1, %v455_v10 }
 0x12f   :  { %v159_v15 = vpop.f32.mrb[0].mxu0  ;;  %v238_v20 = vpop.f32.mrb[0].mxu1 }
 0x130   :  { %v160_v17 = vadd.f32 %v383_v14, %v159_v15  ;;  %v423_v18 = vpop.f32.mrb[1].mxu0  ;;  %v239_v24 = vadd.f32 %v390_v16, %v238_v20  ;;  %v431_v25 = vpop.f32.mrb[1].mxu1 }
 0x131   :  { %v162_v19 = vpop.f32.mrb[2].mxu0  ;;  %v241_v26 = vpop.f32.mrb[2].mxu1 }
 0x132   :  { %v402_v21 = vpack.c.bf16 %v160_v17, %v160_v17  ;;  %v163_v22 = vadd.f32 %v383_v14, %v162_v19  ;;  %v424_v23 = vpop.f32.mrb[3].mxu0  ;;  %v404_v28 = vpack.c.bf16 %v239_v24, %v239_v24  ;;  %v242_v29 = vadd.f32 %v390_v16, %v241_v26  ;;  %v432_v30 = vpop.f32.mrb[3].mxu1 }
 0x134   :  { %v403_v27 = vpack.c.bf16 %v163_v22, %v163_v22  ;;  %175 = vst.msk [vmem:[#allocation10] sm:$0xf] %vm174_vm2, %v402_v21  ;;  %v405_v31 = vpack.c.bf16 %v242_v29, %v242_v29  ;;  %253 = vst.msk [vmem:[#allocation11] sm:$0xf] %vm174_vm2, %v404_v28 }
 0x136   :  { %176 = vst.msk [vmem:[#allocation10 + $0x4] sm:$0xf] %vm174_vm2, %v403_v27 }
 0x137   :  { %558 = shalt.err (!%p555_p8)
}
 0x138   :  { %s559_s26 = scalar_lea.hbm %s844_s7, 128 }
 0x139   :  { %p560_p9 = scmp.ne.s32.totalorder %s844_s7, %s559_s26  ;;  %p563_p10 = scmp.lt.u32.totalorder %s559_s26, %s844_s7 }
 0x13b   :  { %p565_p11 = pnand %p563_p10, %p560_p9 }
 0x13d   :  { %568 = shalt.err (!%p565_p11)
}
 0x13e   :  { %344 = dma.vmem_to_hbm [thread:$0]  %s339_s20, 128, %s844_s7, [#allocation4], %s625_s21, %s625_s21, %s626_s22   ;;  %254 = vst.msk [vmem:[#allocation11 + $0x4] sm:$0xf] %vm174_vm2, %v405_v31 }
 0x13f   :  { %s569_s11 = scalar_lea.vmem %s779_s4, 128  ;;  %p574_p13 = scmp.lt.s32.totalorder %s779_s4, %s779_s4 }
 0x140   :  { %p570_p12 = scmp.ne.s32.totalorder %s779_s4, %s569_s11  ;;  %p575_p0 = scmp.lt.s32.totalorder %s569_s11, %s569_s11 }
 0x142   :  { %p576_p1 = por %p575_p0, %p574_p13 }
 0x144   :  { %p577_p2 = pnand %p576_p1, %p570_p12 }
 0x146   :  { %580 = shalt.err (!%p577_p2)
}
 0x147   :  { %s581_s10 = scalar_lea.hbm %s845_s8, 128 }
 0x148   :  { %p582_p3 = scmp.ne.s32.totalorder %s845_s8, %s581_s10  ;;  %p585_p4 = scmp.lt.u32.totalorder %s581_s10, %s845_s8 }
 0x14a   :  { %p587_p5 = pnand %p585_p4, %p582_p3 }
 0x14c   :  { %590 = shalt.err (!%p587_p5)
}
 0x14d   :  { %356 = dma.vmem_to_hbm [thread:$0]  %s779_s4, 128, %s845_s8, [#allocation12], %s625_s21, %s625_s21, %s626_s22   ;;  %v316_v33 = vpop.f32.mrb[4].mxu0 }
 0x14e   :  { %v396_v32 = vld [vmem:[%s843_s6] ss:$0 sm:$0xff]  ;;  %v439_v35 = vpop.f32.mrb[5].mxu0  ;;  %s633_s19 = smov [#allocation13]  }
 0x14f   :  { %v317_v34 = vadd.f32 %v396_v32, %v316_v33  ;;  %v319_v36 = vpop.f32.mrb[6].mxu0  ;;  %s362_s20 = sshll.u32 %s633_s19, 4  ;;  %s363_s20 = int_to_ptr.vmem [resolvable:$true] %s362_s20 }
 0x150   :  { %v320_v38 = vadd.f32 %v396_v32, %v319_v36  ;;  %v440_v39 = vpop.f32.mrb[7].mxu0  ;;  %s591_s8 = scalar_lea.vmem %s363_s20, 128  ;;  %p596_p7 = scmp.lt.s32.totalorder %s363_s20, %s363_s20 }
 0x151   :  { %v406_v37 = vpack.c.bf16 %v317_v34, %v317_v34  ;;  %p592_p6 = scmp.ne.s32.totalorder %s363_s20, %s591_s8  ;;  %p597_p8 = scmp.lt.s32.totalorder %s591_s8, %s591_s8 }
 0x152   :  { %v407_v40 = vpack.c.bf16 %v320_v38, %v320_v38 }
 0x153   :  { %331 = vst.msk [vmem:[#allocation13] sm:$0xf] %vm174_vm2, %v406_v37  ;;  %p598_p9 = por %p597_p8, %p596_p7 }
 0x154   :  { %332 = vst.msk [vmem:[#allocation13 + $0x4] sm:$0xf] %vm174_vm2, %v407_v40 }
 0x155   :  { %p599_p10 = pnand %p598_p9, %p592_p6 }
 0x157   :  { %602 = shalt.err (!%p599_p10)
}
 0x158   :  { %s603_s4 = scalar_lea.hbm %s846_s9, 128 }
 0x159   :  { %p604_p11 = scmp.ne.s32.totalorder %s846_s9, %s603_s4  ;;  %p607_p12 = scmp.lt.u32.totalorder %s603_s4, %s846_s9 }
 0x15b   :  { %p609_p13 = pnand %p607_p12, %p604_p11 }
 0x15d   :  { %612 = shalt.err (!%p609_p13)
}
 0x15e   :  { %368 = dma.vmem_to_hbm [thread:$0]  %s363_s20, 128, %s846_s9, [#allocation12], %s625_s21, %s625_s21, %s626_s22  }
 0x15f   :  { %619 = dma.done.wait [#allocation4], 128  }
 0x160   :  { %620 = vsyncadd [#allocation4], 4294967168 }
 0x161   :  { %621 = dma.done.wait [#allocation12], 256  }
 0x162   :  { %622 = vsyncadd [#allocation12], 4294967040 }
 0x163   :  { %378 = vsyncpa [#allocation3], 1 }
 0x164   :  { %379 = vsyncpa [#allocation6], 1 }
 0x165   :  { %380 = vsyncpa [#allocation9], 1 }
 0x166   :  { %381 = vsyncpa [#allocation4], 1 }
 0x167   :  { %382 = vsyncpa [#allocation12], 1 }

</bundles_post_ra>
